<compile_context>
chip_gen: v5e
topology: v5e:2x2
jax: 0.10.0
libtpu: 0.0.40
codegen_flags: <defaults>
</compile_context>

<pallas_src>
import functools

import jax
import jax.numpy as jnp
from jax.experimental import pallas as pl
from jax.experimental.pallas import tpu as pltpu

BN_EPS = 1e-5
LANE = 128
SUBLANE = 8


def _round_up(x, m):
    return (x + m - 1) // m * m


def _vmem_limit(working_set_bytes):
    # 2x headroom + compiler-internal scratch, clamped to [32 MiB, 64 MiB]
    # (64 MiB = v7x physical VMEM; v5e/v6e have 128 MiB so this is safe).
    return int(min(max(2 * working_set_bytes + (4 << 20), 32 << 20), 64 << 20))


# ----------------------------------------------------------------------------
# Pass 1: K-tiled matmul (f32 VMEM accumulator) + per-M-tile channel stats.
# Grid: (num_m ["parallel" -> megacore], num_k ["arbitrary", innermost]).
# ----------------------------------------------------------------------------
def _matmul_stats_kernel(p_ref, w_ref, y_ref, sum_ref, sq_ref, acc_ref):
    # p_ref:   (TM, TK)      bf16 patch tile
    # w_ref:   (TK, Cpad)    bf16 weight tile
    # y_ref:   (TM, Cpad)    bf16 conv output tile (written at last K step)
    # sum_ref: (1, 8, Cpad)  f32 per-M-tile partial channel sums
    # sq_ref:  (1, 8, Cpad)  f32 per-M-tile partial channel sums of squares
    # acc_ref: (TM, Cpad)    f32 VMEM scratch accumulator
    k = pl.program_id(1)

    @pl.when(k == 0)
    def _():
        acc_ref[...] = jnp.zeros_like(acc_ref)

    acc_ref[...] += jnp.dot(p_ref[...], w_ref[...],
                            preferred_element_type=jnp.float32)

    @pl.when(k == pl.num_programs(1) - 1)
    def _():
        y = acc_ref[...]                                   # f32 accumulator
        tm, cpad = y.shape
        # Exact partial reduction to an (8, Cpad) sublane block; the final
        # reduction over tiles (and the /M) happens on the host.
        y3 = y.reshape(tm // SUBLANE, SUBLANE, cpad)
        sum_ref[0] = jnp.sum(y3, axis=0)
        sq_ref[0] = jnp.sum(y3 * y3, axis=0)
        y_ref[...] = y.astype(y_ref.dtype)                 # bf16 store to HBM


# ----------------------------------------------------------------------------
# Pass 2: per-channel affine (precomputed scale/shift) + ReLU, fully tiled.
# ----------------------------------------------------------------------------
def _norm_relu_kernel(y_ref, scale_ref, shift_ref, o_ref):
    y = y_ref[...].astype(jnp.float32)
    o_ref[...] = jnp.maximum(y * scale_ref[...] + shift_ref[...], 0.0)


# ----------------------------------------------------------------------------
# Host-side glue.
# ----------------------------------------------------------------------------
def _im2col(x, kh, kw, sh, sw):
    # x: [N, Cin, H, W] -> P: [N*OH*OW, Cin*KH*KW] (Cin-major, then KH, KW)
    # to match PyTorch weight.reshape(Cout, -1).
    n, c, h, w = x.shape
    oh = (h - kh) // sh + 1
    ow = (w - kw) // sw + 1
    cols = []
    for i in range(kh):
        for j in range(kw):
            sl = x[:, :, i : i + sh * (oh - 1) + 1 : sh, j : j + sw * (ow - 1) + 1 : sw]
            cols.append(sl)  # [N, Cin, OH, OW]
    pats = jnp.stack(cols, axis=0).reshape(kh, kw, n, c, oh, ow)
    pats = pats.transpose(2, 4, 5, 3, 0, 1)  # [N, OH, OW, Cin, KH, KW]
    return pats.reshape(n * oh * ow, c * kh * kw), oh, ow


@functools.partial(jax.jit, static_argnums=(4, 5),
                   static_argnames=("tile_m", "tile_k"))
def conv_block_forward(x, weight, gamma, beta, stride_h, stride_w, *,
                       tile_m=512, tile_k=1024):
    """x: [N, Cin, H, W] (NCHW), weight: [Cout, Cin, KH, KW] (PyTorch layout)."""
    n, cin, h, w = x.shape
    cout, _, kh, kw = weight.shape

    # im2col in bf16 (MXU inputs; f32 accumulation inside the kernel).
    patches, oh, ow = _im2col(x.astype(jnp.bfloat16), kh, kw, stride_h, stride_w)
    m = n * oh * ow
    k = cin * kh * kw

    # Pad to MXU / lane friendly sizes; pick tiles (tile_m is a mult of 16,
    # tile_k a mult of 128, so bf16 sublane/lane tiling constraints hold).
    c_pad = _round_up(cout, LANE)                 # lane-dense output stores
    tk = min(tile_k, _round_up(k, LANE))          # K tile, 128-aligned
    k_pad = _round_up(k, tk)
    tm = min(tile_m, _round_up(m, SUBLANE))       # M tile, sublane-aligned
    m_pad = _round_up(m, tm)
    num_m = m_pad // tm
    num_k = k_pad // tk

    p = jnp.zeros((m_pad, k_pad), jnp.bfloat16).at[:m, :k].set(patches)
    w_mat = (
        jnp.zeros((k_pad, c_pad), jnp.bfloat16)
        .at[:k, :cout]
        .set(weight.astype(jnp.bfloat16).reshape(cout, k).T)
    )

    # ---- Pass 1: Y = P @ W (bf16 out) + per-tile channel sum / sumsq. ----
    y_bytes = m_pad * c_pad * 2
    stats_bytes = num_m * SUBLANE * c_pad * 4
    cost = pl.CostEstimate(
        flops=2 * m_pad * k_pad * c_pad,
        transcendentals=0,
        bytes_accessed=p.size * 2 + w_mat.size * 2 + y_bytes + 2 * stats_bytes,
    )
    ws1 = (2 * tm * tk * 2          # P tile, double buffered, bf16
           + 2 * tk * c_pad * 2     # W tile, double buffered, bf16
           + 2 * tm * c_pad * 2     # Y out tile, double buffered, bf16
           + 4 * SUBLANE * c_pad * 4  # two stats outputs, double buffered
           + tm * c_pad * 4)        # f32 scratch accumulator
    y, csum, csq = pl.pallas_call(
        _matmul_stats_kernel,
        out_shape=(
            jax.ShapeDtypeStruct((m_pad, c_pad), jnp.bfloat16),
            jax.ShapeDtypeStruct((num_m, SUBLANE, c_pad), jnp.float32),
            jax.ShapeDtypeStruct((num_m, SUBLANE, c_pad), jnp.float32),
        ),
        grid_spec=pltpu.PrefetchScalarGridSpec(
            num_scalar_prefetch=0,
            grid=(num_m, num_k),
            in_specs=[
                pl.BlockSpec((tm, tk), lambda i, kk: (i, kk)),      # P tile
                pl.BlockSpec((tk, c_pad), lambda i, kk: (kk, 0)),   # W tile
            ],
            out_specs=[
                pl.BlockSpec((tm, c_pad), lambda i, kk: (i, 0)),         # Y
                pl.BlockSpec((1, SUBLANE, c_pad), lambda i, kk: (i, 0, 0)),
                pl.BlockSpec((1, SUBLANE, c_pad), lambda i, kk: (i, 0, 0)),
            ],
            scratch_shapes=[pltpu.VMEM((tm, c_pad), jnp.float32)],
        ),
        compiler_params=pltpu.CompilerParams(
            # M axis is parallel (per-tile stats -> no cross-step carry);
            # K reduction axis is innermost and "arbitrary".
            dimension_semantics=("parallel", "arbitrary"),
            vmem_limit_bytes=_vmem_limit(ws1),
        ),
        cost_estimate=cost,
    )(p, w_mat)

    # ---- Tiny host-side step: batch stats -> per-channel scale / shift. ----
    # Zero-padded tail rows contribute 0 to sum/sumsq; divide by the TRUE M.
    csum = jnp.sum(csum, axis=(0, 1))
    csq = jnp.sum(csq, axis=(0, 1))
    mean = csum / m
    var = jnp.maximum(csq / m - mean * mean, 0.0)  # biased variance (BN train)
    inv_std = jax.lax.rsqrt(var + BN_EPS)
    # NOTE: padded channels rely on zero-padded gamma/beta -> scale=shift=0.
    g = jnp.zeros((c_pad,), jnp.float32).at[:cout].set(gamma.astype(jnp.float32))
    b = jnp.zeros((c_pad,), jnp.float32).at[:cout].set(beta.astype(jnp.float32))
    scale = (g * inv_std).reshape(1, c_pad)
    shift = (b - mean * g * inv_std).reshape(1, c_pad)

    # ---- Pass 2: fused normalize + ReLU (memory-bound, megacore-parallel). --
    ws2 = 2 * tm * c_pad * 2 + 2 * tm * c_pad * 4 + 4 * c_pad * 4
    out_flat = pl.pallas_call(
        _norm_relu_kernel,
        out_shape=jax.ShapeDtypeStruct((m_pad, c_pad), jnp.float32),
        grid_spec=pltpu.PrefetchScalarGridSpec(
            num_scalar_prefetch=0,
            grid=(num_m,),
            in_specs=[
                pl.BlockSpec((tm, c_pad), lambda i: (i, 0)),
                pl.BlockSpec((1, c_pad), lambda i: (0, 0)),
                pl.BlockSpec((1, c_pad), lambda i: (0, 0)),
            ],
            out_specs=pl.BlockSpec((tm, c_pad), lambda i: (i, 0)),
        ),
        compiler_params=pltpu.CompilerParams(
            dimension_semantics=("parallel",),
            vmem_limit_bytes=_vmem_limit(ws2),
        ),
    )(y, scale, shift)

    # Crop padding + NHWC->NCHW (XLA fuses slice+transpose into one copy).
    # TODO(synk): for large outputs, emit per-image (N, Cpad, OHW) blocks from
    #             pass 2 (in-kernel transpose on the idle XLU) to skip this.
    return out_flat[:m, :cout].reshape(n, oh, ow, cout).transpose(0, 3, 1, 2)


if __name__ == "__main__":
    # Small shapes consistent with the module's forward.
    N, CIN, H, W = 2, 4, 16, 16
    COUT, KH, KW, SH, SW = 8, 3, 3, 1, 1

    key = jax.random.PRNGKey(0)
    kx, kw_ = jax.random.split(key)

    x = jax.random.normal(kx, (N, CIN, H, W), dtype=jnp.float32)
    # Conv weight: deterministic init (kaiming-uniform-ish scale, no bias).
    fan_in = CIN * KH * KW
    bound = (1.0 / fan_in) ** 0.5
    weight = jax.random.uniform(
        kw_, (COUT, CIN, KH, KW), minval=-bound, maxval=bound, dtype=jnp.float32
    )
    # BatchNorm2d default affine init: gamma=1, beta=0.
    gamma = jnp.ones((COUT,), dtype=jnp.float32)
    beta = jnp.zeros((COUT,), dtype=jnp.float32)

    out = conv_block_forward(x, weight, gamma, beta, SH, SW)
    jax.block_until_ready(out)

    OH = (H - KH) // SH + 1
    OW = (W - KW) // SW + 1
    assert out.shape == (N, COUT, OH, OW)
    assert bool(jnp.all(out >= 0.0))

    # Pure-JAX reference mirroring the kernel's numerics: bf16 conv operands,
    # f32 batch statistics, bf16-rounded Y before the affine+ReLU epilogue.
    xr = x.astype(jnp.bfloat16).astype(jnp.float32)
    wr = weight.astype(jnp.bfloat16).astype(jnp.float32)
    conv = jax.lax.conv_general_dilated(
        xr, wr, (SH, SW), "VALID",
        dimension_numbers=("NCHW", "OIHW", "NCHW"),
        precision=jax.lax.Precision.HIGHEST,
    )
    mu = conv.mean(axis=(0, 2, 3), keepdims=True)
    var = conv.var(axis=(0, 2, 3), keepdims=True)  # biased, matches BN training
    conv_bf = conv.astype(jnp.bfloat16).astype(jnp.float32)
    ref = jnp.maximum(
        (conv_bf - mu) * jax.lax.rsqrt(var + BN_EPS) * gamma.reshape(1, -1, 1, 1)
        + beta.reshape(1, -1, 1, 1),
        0.0,
    )
    max_err = float(jnp.max(jnp.abs(out - ref)))
    # Tolerance accounts for the bf16 Y intermediate (documented design choice).
    assert max_err < 2e-2, f"max abs error {max_err}"
    print("KERNEL_OK")
</pallas_src>

<mosaic_0001>
module attributes {stable_mosaic.version = 11 : i64} {
  func.func @_norm_relu_kernel(%arg0: i32, %arg1: memref<392x128xbf16, #tpu.memory_space<vmem>>, %arg2: memref<1x128xf32, #tpu.memory_space<vmem>>, %arg3: memref<1x128xf32, #tpu.memory_space<vmem>>, %arg4: memref<392x128xf32, #tpu.memory_space<vmem>>) attributes {dimension_semantics = [#tpu.dimension_semantics<parallel>], iteration_bounds = array<i64: 1>, scalar_prefetch = 0 : i64, scratch_operands = 0 : i64, tpu.core_type = #tpu.core_type<tc>, window_params = [{transform_indices = @transform_0, window_bounds = array<i64: 392, 128>}, {pipeline_mode = #tpu.pipeline_mode<synchronous>, transform_indices = @transform_1, window_bounds = array<i64: 1, 128>}, {pipeline_mode = #tpu.pipeline_mode<synchronous>, transform_indices = @transform_2, window_bounds = array<i64: 1, 128>}, {transform_indices = @transform_3, window_bounds = array<i64: 392, 128>}]} {
    %c0 = arith.constant 0 : index
    %c0_0 = arith.constant 0 : index
    %0 = vector.load %arg1[%c0, %c0_0] : memref<392x128xbf16, #tpu.memory_space<vmem>>, vector<392x128xbf16>
    %1 = arith.extf %0 : vector<392x128xbf16> to vector<392x128xf32>
    %c0_1 = arith.constant 0 : index
    %c0_2 = arith.constant 0 : index
    %2 = vector.load %arg2[%c0_1, %c0_2] : memref<1x128xf32, #tpu.memory_space<vmem>>, vector<1x128xf32>
    %3 = vector.broadcast %2 : vector<1x128xf32> to vector<392x128xf32>
    %4 = arith.mulf %1, %3 : vector<392x128xf32>
    %c0_3 = arith.constant 0 : index
    %c0_4 = arith.constant 0 : index
    %5 = vector.load %arg3[%c0_3, %c0_4] : memref<1x128xf32, #tpu.memory_space<vmem>>, vector<1x128xf32>
    %6 = vector.broadcast %5 : vector<1x128xf32> to vector<392x128xf32>
    %7 = arith.addf %4, %6 : vector<392x128xf32>
    %cst = arith.constant 0.000000e+00 : f32
    %8 = vector.broadcast %cst : f32 to vector<392x128xf32>
    %9 = arith.maximumf %7, %8 : vector<392x128xf32>
    %c0_5 = arith.constant 0 : index
    %c0_6 = arith.constant 0 : index
    %10 = vector.load %arg4[%c0_5, %c0_6] : memref<392x128xf32, #tpu.memory_space<vmem>>, vector<392x128xf32>
    tpu.vector_store %arg4[%c0_5, %c0_6], %9 {strides = array<i32>} : memref<392x128xf32, #tpu.memory_space<vmem>>, vector<392x128xf32>,
    return
  }
  func.func @transform_0(%arg0: i32) -> (i32, i32) {
    %c0_i32 = arith.constant 0 : i32
    %c0_i32_0 = arith.constant 0 : i32
    return %arg0, %c0_i32 : i32, i32
  }
  func.func @transform_1(%arg0: i32) -> (i32, i32) {
    %c0_i32 = arith.constant 0 : i32
    %c0_i32_0 = arith.constant 0 : i32
    %c0_i32_1 = arith.constant 0 : i32
    return %c0_i32, %c0_i32_0 : i32, i32
  }
  func.func @transform_2(%arg0: i32) -> (i32, i32) {
    %c0_i32 = arith.constant 0 : i32
    %c0_i32_0 = arith.constant 0 : i32
    %c0_i32_1 = arith.constant 0 : i32
    return %c0_i32, %c0_i32_0 : i32, i32
  }
  func.func @transform_3(%arg0: i32) -> (i32, i32) {
    %c0_i32 = arith.constant 0 : i32
    %c0_i32_0 = arith.constant 0 : i32
    return %arg0, %c0_i32 : i32, i32
  }
}

module attributes {stable_mosaic.version = 11 : i64} {
  func.func @_matmul_stats_kernel(%arg0: i32, %arg1: i32, %arg2: memref<392x128xbf16, #tpu.memory_space<vmem>>, %arg3: memref<128x128xbf16, #tpu.memory_space<vmem>>, %arg4: memref<392x128xbf16, #tpu.memory_space<vmem>>, %arg5: memref<1x8x128xf32, #tpu.memory_space<vmem>>, %arg6: memref<1x8x128xf32, #tpu.memory_space<vmem>>, %arg7: memref<392x128xf32, #tpu.memory_space<vmem>>) attributes {dimension_semantics = [#tpu.dimension_semantics<parallel>, #tpu.dimension_semantics<arbitrary>], iteration_bounds = array<i64: 1, 1>, scalar_prefetch = 0 : i64, scratch_operands = 1 : i64, tpu.core_type = #tpu.core_type<tc>, window_params = [{transform_indices = @transform_0, window_bounds = array<i64: 392, 128>}, {transform_indices = @transform_1, window_bounds = array<i64: 128, 128>}, {transform_indices = @transform_2, window_bounds = array<i64: 392, 128>}, {transform_indices = @transform_3, window_bounds = array<i64: 1, 8, 128>}, {transform_indices = @transform_4, window_bounds = array<i64: 1, 8, 128>}]} {
    %c0_i32 = arith.constant 0 : i32
    %0 = arith.cmpi eq, %arg1, %c0_i32 : i32
    %1 = arith.extui %0 : i1 to i32
    %c0_i32_0 = arith.constant 0 : i32
    %2 = arith.cmpi ne, %1, %c0_i32_0 : i32
    scf.if %2 {
      %cst_10 = arith.constant 0.000000e+00 : f32
      %12 = vector.broadcast %cst_10 : f32 to vector<392x128xf32>
      %c0_11 = arith.constant 0 : index
      %c0_12 = arith.constant 0 : index
      %13 = vector.load %arg7[%c0_11, %c0_12] : memref<392x128xf32, #tpu.memory_space<vmem>>, vector<392x128xf32>
      tpu.vector_store %arg7[%c0_11, %c0_12], %12 {strides = array<i32>} : memref<392x128xf32, #tpu.memory_space<vmem>>, vector<392x128xf32>,
    } else {
    }
    %c0 = arith.constant 0 : index
    %c0_1 = arith.constant 0 : index
    %3 = vector.load %arg7[%c0, %c0_1] : memref<392x128xf32, #tpu.memory_space<vmem>>, vector<392x128xf32>
    %c0_2 = arith.constant 0 : index
    %c0_3 = arith.constant 0 : index
    %4 = vector.load %arg2[%c0_2, %c0_3] : memref<392x128xbf16, #tpu.memory_space<vmem>>, vector<392x128xbf16>
    %c0_4 = arith.constant 0 : index
    %c0_5 = arith.constant 0 : index
    %5 = vector.load %arg3[%c0_4, %c0_5] : memref<128x128xbf16, #tpu.memory_space<vmem>>, vector<128x128xbf16>
    %cst = arith.constant dense<0.000000e+00> : vector<392x128xf32>
    %6 = tpu.matmul %4, %5, %cst {dimension_numbers = #tpu.dot_dimension_numbers<[1], [0], [0], [1], [0, 0, 1, 1], [], []>} : vector<392x128xbf16>, vector<128x128xbf16>, vector<392x128xf32> -> vector<392x128xf32>
    %7 = arith.addf %3, %6 : vector<392x128xf32>
    %c0_6 = arith.constant 0 : index
    %c0_7 = arith.constant 0 : index
    %8 = vector.load %arg7[%c0_6, %c0_7] : memref<392x128xf32, #tpu.memory_space<vmem>>, vector<392x128xf32>
    tpu.vector_store %arg7[%c0_6, %c0_7], %7 {strides = array<i32>} : memref<392x128xf32, #tpu.memory_space<vmem>>, vector<392x128xf32>,
    %c0_i32_8 = arith.constant 0 : i32
    %9 = arith.cmpi eq, %arg1, %c0_i32_8 : i32
    %10 = arith.extui %9 : i1 to i32
    %c0_i32_9 = arith.constant 0 : i32
    %11 = arith.cmpi ne, %10, %c0_i32_9 : i32
    scf.if %11 {
      %c0_10 = arith.constant 0 : index
      %c0_11 = arith.constant 0 : index
      %12 = vector.load %arg7[%c0_10, %c0_11] : memref<392x128xf32, #tpu.memory_space<vmem>>, vector<392x128xf32>
      %13 = vector.shape_cast %12 : vector<392x128xf32> to vector<49x8x128xf32>
      %cst_12 = arith.constant dense<0.000000e+00> : vector<8x128xf32>
      %14 = vector.multi_reduction <add>, %13, %cst_12 [0] : vector<49x8x128xf32> to vector<8x128xf32>
      %c0_13 = arith.constant 0 : index
      %c0_14 = arith.constant 0 : index
      %c0_15 = arith.constant 0 : index
      %15 = vector.load %arg5[%c0_13, %c0_14, %c0_15] : memref<1x8x128xf32, #tpu.memory_space<vmem>>, vector<1x8x128xf32>
      %16 = vector.shape_cast %15 : vector<1x8x128xf32> to vector<8x128xf32>
      %17 = vector.shape_cast %14 : vector<8x128xf32> to vector<1x8x128xf32>
      tpu.vector_store %arg5[%c0_13, %c0_14, %c0_15], %17 {strides = array<i32>} : memref<1x8x128xf32, #tpu.memory_space<vmem>>, vector<1x8x128xf32>,
      %18 = arith.mulf %13, %13 : vector<49x8x128xf32>
      %cst_16 = arith.constant dense<0.000000e+00> : vector<8x128xf32>
      %19 = vector.multi_reduction <add>, %18, %cst_16 [0] : vector<49x8x128xf32> to vector<8x128xf32>
      %c0_17 = arith.constant 0 : index
      %c0_18 = arith.constant 0 : index
      %c0_19 = arith.constant 0 : index
      %20 = vector.load %arg6[%c0_17, %c0_18, %c0_19] : memref<1x8x128xf32, #tpu.memory_space<vmem>>, vector<1x8x128xf32>
      %21 = vector.shape_cast %20 : vector<1x8x128xf32> to vector<8x128xf32>
      %22 = vector.shape_cast %19 : vector<8x128xf32> to vector<1x8x128xf32>
      tpu.vector_store %arg6[%c0_17, %c0_18, %c0_19], %22 {strides = array<i32>} : memref<1x8x128xf32, #tpu.memory_space<vmem>>, vector<1x8x128xf32>,
      %23 = arith.truncf %12 : vector<392x128xf32> to vector<392x128xbf16>
      %c0_20 = arith.constant 0 : index
      %c0_21 = arith.constant 0 : index
      %24 = vector.load %arg4[%c0_20, %c0_21] : memref<392x128xbf16, #tpu.memory_space<vmem>>, vector<392x128xbf16>
      tpu.vector_store %arg4[%c0_20, %c0_21], %23 {strides = array<i32>} : memref<392x128xbf16, #tpu.memory_space<vmem>>, vector<392x128xbf16>,
    } else {
    }
    return
  }
  func.func @transform_0(%arg0: i32, %arg1: i32) -> (i32, i32) {
    %c0_i32 = arith.constant 0 : i32
    return %arg0, %arg1 : i32, i32
  }
  func.func @transform_1(%arg0: i32, %arg1: i32) -> (i32, i32) {
    %c0_i32 = arith.constant 0 : i32
    %c0_i32_0 = arith.constant 0 : i32
    return %arg1, %c0_i32 : i32, i32
  }
  func.func @transform_2(%arg0: i32, %arg1: i32) -> (i32, i32) {
    %c0_i32 = arith.constant 0 : i32
    %c0_i32_0 = arith.constant 0 : i32
    return %arg0, %c0_i32 : i32, i32
  }
  func.func @transform_3(%arg0: i32, %arg1: i32) -> (i32, i32, i32) {
    %c0_i32 = arith.constant 0 : i32
    %c0_i32_0 = arith.constant 0 : i32
    %c0_i32_1 = arith.constant 0 : i32
    return %arg0, %c0_i32, %c0_i32_0 : i32, i32, i32
  }
  func.func @transform_4(%arg0: i32, %arg1: i32) -> (i32, i32, i32) {
    %c0_i32 = arith.constant 0 : i32
    %c0_i32_0 = arith.constant 0 : i32
    %c0_i32_1 = arith.constant 0 : i32
    return %arg0, %c0_i32, %c0_i32_0 : i32, i32, i32
  }
}

</mosaic_0001>

<bundles_post_ra>
// kernel: conv_block_forward.3
= control target key start
LH: loop header
LB: loop body
LE: loop exit
PB: predicated region body
PF: predicated region fallthrough
CT: control target
= control target key end

     0   :  { %s791_s0 = inlined_call_operand.vmem [shape: bf16[392,128], index: 0, kind: input, shape index: {}]   ;;  %s792_s1 = inlined_call_operand.vmem [shape: f32[1,128], index: 1, kind: input, shape index: {}]   ;;  %s793_s2 = inlined_call_operand.vmem [shape: f32[1,128], index: 2, kind: input, shape index: {}]   ;;  %s794_s3 = inlined_call_operand.vmem [shape: f32[392,128], index: 3, kind: output, shape index: {}]  }
   0x1   :  { %v321_v0 = vld [vmem:[%s791_s0] sm:$0xff]   ;;  %v416_v5 = vld [vmem:[%s791_s0 + $0x8] sm:$0xff]   ;;  %v417_v8 = vld [vmem:[%s791_s0 + $0x10] sm:$0xff]  }
   0x2   :  { %v467_v1 = vld [vmem:[%s792_s1] ss:$0 sm:$0xff]  ;;  %v322_v2 = vunpack.c.l.bf16 %v321_v0  ;;  %v323_v4 = vunpack.c.h.bf16 %v321_v0  ;;  %v326_v6 = vunpack.c.l.bf16 %v416_v5  ;;  %v327_v7 = vunpack.c.h.bf16 %v416_v5  ;;  %v418_v9 = vld [vmem:[%s791_s0 + $0x18] sm:$0xff]   ;;  %v420_v31 = vld [vmem:[%s791_s0 + $0x28] sm:$0xff]  }
   0x3   :  { %v472_v3 = vld [vmem:[%s793_s2] ss:$0 sm:$0xff]  ;;  %v330_v12 = vunpack.c.l.bf16 %v417_v8  ;;  %v331_v13 = vunpack.c.h.bf16 %v417_v8  ;;  %v334_v16 = vunpack.c.l.bf16 %v418_v9  ;;  %v335_v17 = vunpack.c.h.bf16 %v418_v9  ;;  %v421_v36 = vld [vmem:[%s791_s0 + $0x30] sm:$0xff]   ;;  %v422_v41 = vld [vmem:[%s791_s0 + $0x38] sm:$0xff]  }
   0x4   :  { %v116_v10 = vmul.f32 %v467_v1, %v322_v2  ;;  %v117_v11 = vmul.f32 %v467_v1, %v323_v4  ;;  %v118_v14 = vmul.f32 %v467_v1, %v326_v6  ;;  %v119_v15 = vmul.f32 %v467_v1, %v327_v7  ;;  %v419_v26 = vld [vmem:[%s791_s0 + $0x20] sm:$0xff]   ;;  %v424_v5 = vld [vmem:[%s791_s0 + $0x48] sm:$0xff]  }
   0x5   :  { %v120_v20 = vmul.f32 %v467_v1, %v330_v12  ;;  %v121_v21 = vmul.f32 %v467_v1, %v331_v13  ;;  %v122_v24 = vmul.f32 %v467_v1, %v334_v16  ;;  %v123_v25 = vmul.f32 %v467_v1, %v335_v17  ;;  %v423_v62 = vld [vmem:[%s791_s0 + $0x40] sm:$0xff]  }
   0x6   :  { %v169_v18 = vadd.f32 %v472_v3, %v116_v10  ;;  %v170_v19 = vadd.f32 %v472_v3, %v117_v11  ;;  %v171_v22 = vadd.f32 %v472_v3, %v118_v14  ;;  %v172_v23 = vadd.f32 %v472_v3, %v119_v15  ;;  %v425_v10 = vld [vmem:[%s791_s0 + $0x50] sm:$0xff]   ;;  %v426_v15 = vld [vmem:[%s791_s0 + $0x58] sm:$0xff]  }
   0x7   :  { %v173_v29 = vadd.f32 %v472_v3, %v120_v20  ;;  %v174_v30 = vadd.f32 %v472_v3, %v121_v21  ;;  %v175_v34 = vadd.f32 %v472_v3, %v122_v24  ;;  %v176_v35 = vadd.f32 %v472_v3, %v123_v25 }
   0x8   :  { %v218_v27 = vmax.f32 %v169_v18, 0.0  ;;  %v219_v28 = vmax.f32 %v170_v19, 0.0  ;;  %v220_v32 = vmax.f32 %v171_v22, 0.0  ;;  %v221_v33 = vmax.f32 %v172_v23, 0.0 }
   0x9   :  { %v222_v37 = vmax.f32 %v173_v29, 0.0  ;;  %v223_v38 = vmax.f32 %v174_v30, 0.0  ;;  %v338_v39 = vunpack.c.l.bf16 %v419_v26  ;;  %v339_v40 = vunpack.c.h.bf16 %v419_v26 }
   0xa   :  { %267 = vst [vmem:[%s794_s3] sm:$0xff] %v218_v27  ;;  %v224_v42 = vmax.f32 %v175_v34, 0.0  ;;  %v225_v43 = vmax.f32 %v176_v35, 0.0  ;;  %v342_v44 = vunpack.c.l.bf16 %v420_v31  ;;  %v343_v45 = vunpack.c.h.bf16 %v420_v31 }
   0xb   :  { %268 = vst [vmem:[%s794_s3 + $0x8] sm:$0xff] %v219_v28  ;;  %v124_v46 = vmul.f32 %v467_v1, %v338_v39  ;;  %v125_v47 = vmul.f32 %v467_v1, %v339_v40  ;;  %v346_v48 = vunpack.c.l.bf16 %v421_v36  ;;  %v347_v49 = vunpack.c.h.bf16 %v421_v36  ;;  %v427_v36 = vld [vmem:[%s791_s0 + $0x60] sm:$0xff]  }
   0xc   :  { %269 = vst [vmem:[%s794_s3 + $0x10] sm:$0xff] %v220_v32  ;;  %v126_v50 = vmul.f32 %v467_v1, %v342_v44  ;;  %v127_v51 = vmul.f32 %v467_v1, %v343_v45  ;;  %v350_v52 = vunpack.c.l.bf16 %v422_v41  ;;  %v351_v53 = vunpack.c.h.bf16 %v422_v41  ;;  %v428_v41 = vld [vmem:[%s791_s0 + $0x68] sm:$0xff]  }
   0xd   :  { %270 = vst [vmem:[%s794_s3 + $0x18] sm:$0xff] %v221_v33  ;;  %v177_v54 = vadd.f32 %v472_v3, %v124_v46  ;;  %v178_v55 = vadd.f32 %v472_v3, %v125_v47  ;;  %v128_v56 = vmul.f32 %v467_v1, %v346_v48  ;;  %v129_v57 = vmul.f32 %v467_v1, %v347_v49  ;;  %v429_v46 = vld [vmem:[%s791_s0 + $0x70] sm:$0xff]  }
   0xe   :  { %271 = vst [vmem:[%s794_s3 + $0x20] sm:$0xff] %v222_v37  ;;  %v179_v58 = vadd.f32 %v472_v3, %v126_v50  ;;  %v180_v59 = vadd.f32 %v472_v3, %v127_v51  ;;  %v130_v60 = vmul.f32 %v467_v1, %v350_v52  ;;  %v131_v61 = vmul.f32 %v467_v1, %v351_v53  ;;  %v430_v51 = vld [vmem:[%s791_s0 + $0x78] sm:$0xff]  }
   0xf   :  { %272 = vst [vmem:[%s794_s3 + $0x28] sm:$0xff] %v223_v38  ;;  %v226_v63 = vmax.f32 %v177_v54, 0.0  ;;  %v227_v0 = vmax.f32 %v178_v55, 0.0  ;;  %v181_v2 = vadd.f32 %v472_v3, %v128_v56  ;;  %v182_v4 = vadd.f32 %v472_v3, %v129_v57 }
  0x10   :  { %273 = vst [vmem:[%s794_s3 + $0x30] sm:$0xff] %v224_v42  ;;  %v228_v6 = vmax.f32 %v179_v58, 0.0  ;;  %v229_v7 = vmax.f32 %v180_v59, 0.0  ;;  %v183_v8 = vadd.f32 %v472_v3, %v130_v60  ;;  %v184_v9 = vadd.f32 %v472_v3, %v131_v61 }
  0x11   :  { %274 = vst [vmem:[%s794_s3 + $0x38] sm:$0xff] %v225_v43  ;;  %v230_v11 = vmax.f32 %v181_v2, 0.0  ;;  %v231_v12 = vmax.f32 %v182_v4, 0.0  ;;  %v354_v13 = vunpack.c.l.bf16 %v423_v62  ;;  %v355_v14 = vunpack.c.h.bf16 %v423_v62 }
  0x12   :  { %275 = vst [vmem:[%s794_s3 + $0x40] sm:$0xff] %v226_v63  ;;  %v232_v16 = vmax.f32 %v183_v8, 0.0  ;;  %v233_v17 = vmax.f32 %v184_v9, 0.0  ;;  %v358_v18 = vunpack.c.l.bf16 %v424_v5  ;;  %v359_v19 = vunpack.c.h.bf16 %v424_v5 }
  0x13   :  { %276 = vst [vmem:[%s794_s3 + $0x48] sm:$0xff] %v227_v0  ;;  %v132_v20 = vmul.f32 %v467_v1, %v354_v13  ;;  %v133_v21 = vmul.f32 %v467_v1, %v355_v14  ;;  %v362_v22 = vunpack.c.l.bf16 %v425_v10  ;;  %v363_v23 = vunpack.c.h.bf16 %v425_v10  ;;  %v431_v10 = vld [vmem:[%s791_s0 + $0x80] sm:$0xff]  }
  0x14   :  { %277 = vst [vmem:[%s794_s3 + $0x50] sm:$0xff] %v228_v6  ;;  %v134_v24 = vmul.f32 %v467_v1, %v358_v18  ;;  %v135_v25 = vmul.f32 %v467_v1, %v359_v19  ;;  %v366_v26 = vunpack.c.l.bf16 %v426_v15  ;;  %v367_v27 = vunpack.c.h.bf16 %v426_v15  ;;  %v432_v15 = vld [vmem:[%s791_s0 + $0x88] sm:$0xff]  }
  0x15   :  { %278 = vst [vmem:[%s794_s3 + $0x58] sm:$0xff] %v229_v7  ;;  %v185_v28 = vadd.f32 %v472_v3, %v132_v20  ;;  %v186_v29 = vadd.f32 %v472_v3, %v133_v21  ;;  %v136_v30 = vmul.f32 %v467_v1, %v362_v22  ;;  %v137_v31 = vmul.f32 %v467_v1, %v363_v23  ;;  %v433_v20 = vld [vmem:[%s791_s0 + $0x90] sm:$0xff]  }
  0x16   :  { %279 = vst [vmem:[%s794_s3 + $0x60] sm:$0xff] %v230_v11  ;;  %v187_v32 = vadd.f32 %v472_v3, %v134_v24  ;;  %v188_v33 = vadd.f32 %v472_v3, %v135_v25  ;;  %v138_v34 = vmul.f32 %v467_v1, %v366_v26  ;;  %v139_v35 = vmul.f32 %v467_v1, %v367_v27  ;;  %v434_v25 = vld [vmem:[%s791_s0 + $0x98] sm:$0xff]  }
  0x17   :  { %280 = vst [vmem:[%s794_s3 + $0x68] sm:$0xff] %v231_v12  ;;  %v234_v37 = vmax.f32 %v185_v28, 0.0  ;;  %v235_v38 = vmax.f32 %v186_v29, 0.0  ;;  %v189_v39 = vadd.f32 %v472_v3, %v136_v30  ;;  %v190_v40 = vadd.f32 %v472_v3, %v137_v31 }
  0x18   :  { %281 = vst [vmem:[%s794_s3 + $0x70] sm:$0xff] %v232_v16  ;;  %v236_v42 = vmax.f32 %v187_v32, 0.0  ;;  %v237_v43 = vmax.f32 %v188_v33, 0.0  ;;  %v191_v44 = vadd.f32 %v472_v3, %v138_v34  ;;  %v192_v45 = vadd.f32 %v472_v3, %v139_v35 }
  0x19   :  { %282 = vst [vmem:[%s794_s3 + $0x78] sm:$0xff] %v233_v17  ;;  %v238_v47 = vmax.f32 %v189_v39, 0.0  ;;  %v239_v48 = vmax.f32 %v190_v40, 0.0  ;;  %v370_v49 = vunpack.c.l.bf16 %v427_v36  ;;  %v371_v50 = vunpack.c.h.bf16 %v427_v36 }
  0x1a   :  { %283 = vst [vmem:[%s794_s3 + $0x80] sm:$0xff] %v234_v37  ;;  %v240_v52 = vmax.f32 %v191_v44, 0.0  ;;  %v241_v53 = vmax.f32 %v192_v45, 0.0  ;;  %v374_v54 = vunpack.c.l.bf16 %v428_v41  ;;  %v375_v55 = vunpack.c.h.bf16 %v428_v41 }
  0x1b   :  { %284 = vst [vmem:[%s794_s3 + $0x88] sm:$0xff] %v235_v38  ;;  %v140_v56 = vmul.f32 %v467_v1, %v370_v49  ;;  %v141_v57 = vmul.f32 %v467_v1, %v371_v50  ;;  %v378_v58 = vunpack.c.l.bf16 %v429_v46  ;;  %v379_v59 = vunpack.c.h.bf16 %v429_v46  ;;  %v435_v46 = vld [vmem:[%s791_s0 + $0xa0] sm:$0xff]  }
  0x1c   :  { %285 = vst [vmem:[%s794_s3 + $0x90] sm:$0xff] %v236_v42  ;;  %v142_v60 = vmul.f32 %v467_v1, %v374_v54  ;;  %v143_v61 = vmul.f32 %v467_v1, %v375_v55  ;;  %v382_v62 = vunpack.c.l.bf16 %v430_v51  ;;  %v383_v63 = vunpack.c.h.bf16 %v430_v51  ;;  %v436_v51 = vld [vmem:[%s791_s0 + $0xa8] sm:$0xff]  }
  0x1d   :  { %286 = vst [vmem:[%s794_s3 + $0x98] sm:$0xff] %v237_v43  ;;  %v193_v0 = vadd.f32 %v472_v3, %v140_v56  ;;  %v194_v2 = vadd.f32 %v472_v3, %v141_v57  ;;  %v144_v4 = vmul.f32 %v467_v1, %v378_v58  ;;  %v145_v5 = vmul.f32 %v467_v1, %v379_v59  ;;  %v437_v56 = vld [vmem:[%s791_s0 + $0xb0] sm:$0xff]  }
  0x1e   :  { %287 = vst [vmem:[%s794_s3 + $0xa0] sm:$0xff] %v238_v47  ;;  %v195_v6 = vadd.f32 %v472_v3, %v142_v60  ;;  %v196_v7 = vadd.f32 %v472_v3, %v143_v61  ;;  %v146_v8 = vmul.f32 %v467_v1, %v382_v62  ;;  %v147_v9 = vmul.f32 %v467_v1, %v383_v63  ;;  %v438_v61 = vld [vmem:[%s791_s0 + $0xb8] sm:$0xff]  }
  0x1f   :  { %288 = vst [vmem:[%s794_s3 + $0xa8] sm:$0xff] %v239_v48  ;;  %v242_v11 = vmax.f32 %v193_v0, 0.0  ;;  %v243_v12 = vmax.f32 %v194_v2, 0.0  ;;  %v197_v13 = vadd.f32 %v472_v3, %v144_v4  ;;  %v198_v14 = vadd.f32 %v472_v3, %v145_v5 }
  0x20   :  { %289 = vst [vmem:[%s794_s3 + $0xb0] sm:$0xff] %v240_v52  ;;  %v244_v16 = vmax.f32 %v195_v6, 0.0  ;;  %v245_v17 = vmax.f32 %v196_v7, 0.0  ;;  %v199_v18 = vadd.f32 %v472_v3, %v146_v8  ;;  %v200_v19 = vadd.f32 %v472_v3, %v147_v9 }
  0x21   :  { %290 = vst [vmem:[%s794_s3 + $0xb8] sm:$0xff] %v241_v53  ;;  %v246_v21 = vmax.f32 %v197_v13, 0.0  ;;  %v247_v22 = vmax.f32 %v198_v14, 0.0  ;;  %v386_v23 = vunpack.c.l.bf16 %v431_v10  ;;  %v387_v24 = vunpack.c.h.bf16 %v431_v10 }
  0x22   :  { %291 = vst [vmem:[%s794_s3 + $0xc0] sm:$0xff] %v242_v11  ;;  %v248_v26 = vmax.f32 %v199_v18, 0.0  ;;  %v249_v27 = vmax.f32 %v200_v19, 0.0  ;;  %v390_v28 = vunpack.c.l.bf16 %v432_v15  ;;  %v391_v29 = vunpack.c.h.bf16 %v432_v15 }
  0x23   :  { %292 = vst [vmem:[%s794_s3 + $0xc8] sm:$0xff] %v243_v12  ;;  %v148_v30 = vmul.f32 %v467_v1, %v386_v23  ;;  %v149_v31 = vmul.f32 %v467_v1, %v387_v24  ;;  %v394_v32 = vunpack.c.l.bf16 %v433_v20  ;;  %v395_v33 = vunpack.c.h.bf16 %v433_v20  ;;  %v62_v20 = vld [vmem:[%s791_s0 + $0xc0] sm:$0xf] }
  0x24   :  { %293 = vst [vmem:[%s794_s3 + $0xd0] sm:$0xff] %v244_v16  ;;  %v150_v34 = vmul.f32 %v467_v1, %v390_v28  ;;  %v151_v35 = vmul.f32 %v467_v1, %v391_v29  ;;  %v398_v36 = vunpack.c.l.bf16 %v434_v25  ;;  %v399_v37 = vunpack.c.h.bf16 %v434_v25 }
  0x25   :  { %294 = vst [vmem:[%s794_s3 + $0xd8] sm:$0xff] %v245_v17  ;;  %v201_v38 = vadd.f32 %v472_v3, %v148_v30  ;;  %v202_v39 = vadd.f32 %v472_v3, %v149_v31  ;;  %v152_v40 = vmul.f32 %v467_v1, %v394_v32  ;;  %v153_v41 = vmul.f32 %v467_v1, %v395_v33 }
  0x26   :  { %295 = vst [vmem:[%s794_s3 + $0xe0] sm:$0xff] %v246_v21  ;;  %v203_v42 = vadd.f32 %v472_v3, %v150_v34  ;;  %v204_v43 = vadd.f32 %v472_v3, %v151_v35  ;;  %v154_v44 = vmul.f32 %v467_v1, %v398_v36  ;;  %v155_v45 = vmul.f32 %v467_v1, %v399_v37 }
  0x27   :  { %296 = vst [vmem:[%s794_s3 + $0xe8] sm:$0xff] %v247_v22  ;;  %v250_v47 = vmax.f32 %v201_v38, 0.0  ;;  %v251_v48 = vmax.f32 %v202_v39, 0.0  ;;  %v205_v49 = vadd.f32 %v472_v3, %v152_v40  ;;  %v206_v50 = vadd.f32 %v472_v3, %v153_v41 }
  0x28   :  { %297 = vst [vmem:[%s794_s3 + $0xf0] sm:$0xff] %v248_v26  ;;  %v252_v52 = vmax.f32 %v203_v42, 0.0  ;;  %v253_v53 = vmax.f32 %v204_v43, 0.0  ;;  %v207_v54 = vadd.f32 %v472_v3, %v154_v44  ;;  %v208_v55 = vadd.f32 %v472_v3, %v155_v45 }
  0x29   :  { %298 = vst [vmem:[%s794_s3 + $0xf8] sm:$0xff] %v249_v27  ;;  %v254_v57 = vmax.f32 %v205_v49, 0.0  ;;  %v255_v58 = vmax.f32 %v206_v50, 0.0  ;;  %v402_v59 = vunpack.c.l.bf16 %v435_v46  ;;  %v403_v60 = vunpack.c.h.bf16 %v435_v46 }
  0x2a   :  { %299 = vst [vmem:[%s794_s3 + $0x100] sm:$0xff] %v250_v47  ;;  %v256_v62 = vmax.f32 %v207_v54, 0.0  ;;  %v257_v63 = vmax.f32 %v208_v55, 0.0  ;;  %v406_v0 = vunpack.c.l.bf16 %v436_v51  ;;  %v407_v2 = vunpack.c.h.bf16 %v436_v51 }
  0x2b   :  { %300 = vst [vmem:[%s794_s3 + $0x108] sm:$0xff] %v251_v48  ;;  %v156_v4 = vmul.f32 %v467_v1, %v402_v59  ;;  %v157_v5 = vmul.f32 %v467_v1, %v403_v60  ;;  %v410_v6 = vunpack.c.l.bf16 %v437_v56  ;;  %v411_v7 = vunpack.c.h.bf16 %v437_v56 }
  0x2c   :  { %301 = vst [vmem:[%s794_s3 + $0x110] sm:$0xff] %v252_v52  ;;  %v158_v8 = vmul.f32 %v467_v1, %v406_v0  ;;  %v159_v9 = vmul.f32 %v467_v1, %v407_v2  ;;  %v414_v10 = vunpack.c.l.bf16 %v438_v61  ;;  %v415_v11 = vunpack.c.h.bf16 %v438_v61 }
  0x2d   :  { %302 = vst [vmem:[%s794_s3 + $0x118] sm:$0xff] %v253_v53  ;;  %v209_v12 = vadd.f32 %v472_v3, %v156_v4  ;;  %v210_v13 = vadd.f32 %v472_v3, %v157_v5  ;;  %v160_v14 = vmul.f32 %v467_v1, %v410_v6  ;;  %v161_v15 = vmul.f32 %v467_v1, %v411_v7 }
  0x2e   :  { %303 = vst [vmem:[%s794_s3 + $0x120] sm:$0xff] %v254_v57  ;;  %v211_v16 = vadd.f32 %v472_v3, %v158_v8  ;;  %v212_v17 = vadd.f32 %v472_v3, %v159_v9  ;;  %v162_v18 = vmul.f32 %v467_v1, %v414_v10  ;;  %v163_v19 = vmul.f32 %v467_v1, %v415_v11 }
  0x2f   :  { %304 = vst [vmem:[%s794_s3 + $0x128] sm:$0xff] %v255_v58  ;;  %v258_v21 = vmax.f32 %v209_v12, 0.0  ;;  %v259_v22 = vmax.f32 %v210_v13, 0.0  ;;  %v213_v23 = vadd.f32 %v472_v3, %v160_v14  ;;  %v214_v24 = vadd.f32 %v472_v3, %v161_v15 }
  0x30   :  { %305 = vst [vmem:[%s794_s3 + $0x130] sm:$0xff] %v256_v62  ;;  %v260_v25 = vmax.f32 %v211_v16, 0.0  ;;  %v261_v26 = vmax.f32 %v212_v17, 0.0  ;;  %v215_v27 = vadd.f32 %v472_v3, %v162_v18  ;;  %v216_v28 = vadd.f32 %v472_v3, %v163_v19 }
  0x31   :  { %306 = vst [vmem:[%s794_s3 + $0x138] sm:$0xff] %v257_v63  ;;  %v262_v29 = vmax.f32 %v213_v23, 0.0  ;;  %v111_v30 = vunpack.c.l.bf16 %v62_v20  ;;  %v263_v31 = vmax.f32 %v214_v24, 0.0 }
  0x32   :  { %307 = vst [vmem:[%s794_s3 + $0x140] sm:$0xff] %v258_v21  ;;  %v264_v32 = vmax.f32 %v215_v27, 0.0  ;;  %v265_v34 = vmax.f32 %v216_v28, 0.0 }
  0x33   :  { %308 = vst [vmem:[%s794_s3 + $0x148] sm:$0xff] %v259_v22  ;;  %v164_v33 = vmul.f32 %v467_v1, %v111_v30 }
  0x34   :  { %309 = vst [vmem:[%s794_s3 + $0x150] sm:$0xff] %v260_v25 }
  0x35   :  { %310 = vst [vmem:[%s794_s3 + $0x158] sm:$0xff] %v261_v26  ;;  %v217_v35 = vadd.f32 %v472_v3, %v164_v33 }
  0x36   :  { %311 = vst [vmem:[%s794_s3 + $0x160] sm:$0xff] %v262_v29 }
  0x37   :  { %312 = vst [vmem:[%s794_s3 + $0x168] sm:$0xff] %v263_v31  ;;  %v266_v1 = vmax.f32 %v217_v35, 0.0 }
  0x38   :  { %313 = vst [vmem:[%s794_s3 + $0x170] sm:$0xff] %v264_v32 }
  0x39   :  { %314 = vst [vmem:[%s794_s3 + $0x178] sm:$0xff] %v265_v34 }
  0x3a   :  { %315 = vst [vmem:[%s794_s3 + $0x180] sm:$0xff] %v266_v1 }

// kernel: conv_block_forward.2
= control target key start
LH: loop header
LB: loop body
LE: loop exit
PB: predicated region body
PF: predicated region fallthrough
CT: control target
= control target key end

     0   :  { %s1660_s1 = inlined_call_operand.vmem [shape: bf16[128,128], index: 1, kind: input, shape index: {}]   ;;  %s1661_s0 = inlined_call_operand.vmem [shape: bf16[392,128], index: 0, kind: input, shape index: {}]   ;;  %s1662_s2 = inlined_call_operand.vmem [shape: bf16[392,128], index: 2, kind: output, shape index: {0}]   ;;  %s1663_s3 = inlined_call_operand.vmem [shape: f32[1,8,128], index: 3, kind: output, shape index: {1}]   ;;  %s1664_s4 = inlined_call_operand.vmem [shape: f32[1,8,128], index: 4, kind: output, shape index: {2}]  }
   0x1   :  { %v1076_v0 = vld [vmem:[%s1660_s1 + $0x38] sm:$0xff]  ;;  %v1075_v1 = vld [vmem:[%s1660_s1 + $0x30] sm:$0xff]  ;;  %v1074_v2 = vld [vmem:[%s1660_s1 + $0x28] sm:$0xff] }
   0x2   :  { %377 = vmatpush.bf16.msra.mxu0 %v1076_v0  ;;  %1220 = vmatpush.bf16.msra.mxu1 %v1076_v0  ;;  %v1073_v3 = vld [vmem:[%s1660_s1 + $0x20] sm:$0xff]  ;;  %v1072_v4 = vld [vmem:[%s1660_s1 + $0x18] sm:$0xff]  ;;  %v1071_v5 = vld [vmem:[%s1660_s1 + $0x10] sm:$0xff] }
   0x3   :  { %1221 = vmatpush.bf16.msra.mxu2 %v1076_v0  ;;  %1222 = vmatpush.bf16.msra.mxu3 %v1076_v0  ;;  %v1070_v6 = vld [vmem:[%s1660_s1 + $0x8] sm:$0xff]  ;;  %v1069_v7 = vld [vmem:[%s1660_s1] sm:$0xff]  ;;  %v1051_v9 = vld [vmem:[%s1661_s0 + $0x30] sm:$0xff] }
   0x4   :  { %v1045_v8 = vld [vmem:[%s1661_s0] sm:$0xff]  ;;  %v1046_v11 = vld [vmem:[%s1661_s0 + $0x8] sm:$0xff]  ;;  %v1052_v12 = vld [vmem:[%s1661_s0 + $0x38] sm:$0xff] }
   0x5   :  { %v1057_v10 = vld [vmem:[%s1661_s0 + $0x60] sm:$0xff]  ;;  %v1058_v13 = vld [vmem:[%s1661_s0 + $0x68] sm:$0xff]  ;;  %v1047_v14 = vld [vmem:[%s1661_s0 + $0x10] sm:$0xff] }
   0x6   :  { %378 = vmatpush.bf16.msra.mxu0 %v1075_v1  ;;  %1223 = vmatpush.bf16.msra.mxu1 %v1075_v1  ;;  %v1053_v15 = vld [vmem:[%s1661_s0 + $0x40] sm:$0xff]  ;;  %v1059_v16 = vld [vmem:[%s1661_s0 + $0x70] sm:$0xff]  ;;  %v1064_v17 = vld [vmem:[%s1661_s0 + $0x98] sm:$0xff] }
   0x7   :  { %1224 = vmatpush.bf16.msra.mxu2 %v1075_v1  ;;  %1225 = vmatpush.bf16.msra.mxu3 %v1075_v1  ;;  %v1048_v18 = vld [vmem:[%s1661_s0 + $0x18] sm:$0xff]  ;;  %v1054_v19 = vld [vmem:[%s1661_s0 + $0x48] sm:$0xff]  ;;  %v1065_v21 = vld [vmem:[%s1661_s0 + $0xa0] sm:$0xff] }
   0x8   :  { %v1060_v20 = vld [vmem:[%s1661_s0 + $0x78] sm:$0xff]  ;;  %v1049_v22 = vld [vmem:[%s1661_s0 + $0x20] sm:$0xff]  ;;  %v1055_v23 = vld [vmem:[%s1661_s0 + $0x50] sm:$0xff] }
   0x9   :  { %v1061_v24 = vld [vmem:[%s1661_s0 + $0x80] sm:$0xff]  ;;  %v1066_v25 = vld [vmem:[%s1661_s0 + $0xa8] sm:$0xff]  ;;  %v1056_v27 = vld [vmem:[%s1661_s0 + $0x58] sm:$0xff] }
   0xa   :  { %379 = vmatpush.bf16.msra.mxu0 %v1074_v2  ;;  %1226 = vmatpush.bf16.msra.mxu1 %v1074_v2  ;;  %v1050_v26 = vld [vmem:[%s1661_s0 + $0x28] sm:$0xff]  ;;  %v1067_v29 = vld [vmem:[%s1661_s0 + $0xb0] sm:$0xff]  ;;  %v1068_v31 = vld [vmem:[%s1661_s0 + $0xb8] sm:$0xff] }
   0xb   :  { %1227 = vmatpush.bf16.msra.mxu2 %v1074_v2  ;;  %1228 = vmatpush.bf16.msra.mxu3 %v1074_v2  ;;  %v1062_v28 = vld [vmem:[%s1661_s0 + $0x88] sm:$0xff]  ;;  %v1063_v30 = vld [vmem:[%s1661_s0 + $0x90] sm:$0xff]  ;;  %v164_v32 = vld [vmem:[%s1661_s0 + $0xc0] sm:$0xf] }
   0xc   :  { %v278_v33 = vunpack.c.l.b16 %v164_v32 }
   0xe   :  { %380 = vmatpush.bf16.msra.mxu0 %v1073_v3  ;;  %1229 = vmatpush.bf16.msra.mxu1 %v1073_v3  ;;  %v303_v34 = vpack.c.b16 %v278_v33, %v278_v33 }
   0xf   :  { %1230 = vmatpush.bf16.msra.mxu2 %v1073_v3  ;;  %1231 = vmatpush.bf16.msra.mxu3 %v1073_v3 }
  0x12   :  { %381 = vmatpush.bf16.msra.mxu0 %v1072_v4  ;;  %1232 = vmatpush.bf16.msra.mxu1 %v1072_v4 }
  0x13   :  { %1233 = vmatpush.bf16.msra.mxu2 %v1072_v4  ;;  %1234 = vmatpush.bf16.msra.mxu3 %v1072_v4 }
  0x16   :  { %382 = vmatpush.bf16.msra.mxu0 %v1071_v5  ;;  %1235 = vmatpush.bf16.msra.mxu1 %v1071_v5 }
  0x17   :  { %1236 = vmatpush.bf16.msra.mxu2 %v1071_v5  ;;  %1237 = vmatpush.bf16.msra.mxu3 %v1071_v5 }
  0x1a   :  { %383 = vmatpush.bf16.msra.mxu0 %v1070_v6  ;;  %1238 = vmatpush.bf16.msra.mxu1 %v1070_v6 }
  0x1b   :  { %1239 = vmatpush.bf16.msra.mxu2 %v1070_v6  ;;  %1240 = vmatpush.bf16.msra.mxu3 %v1070_v6 }
  0x1e   :  { %384 = vmatpush.bf16.msra.mxu0 %v1069_v7  ;;  %1241 = vmatpush.bf16.msra.mxu1 %v1069_v7 }
  0x1f   :  { %1242 = vmatpush.bf16.msra.mxu2 %v1069_v7  ;;  %1243 = vmatpush.bf16.msra.mxu3 %v1069_v7 }
  0x21   :  { %385 = vmatmul.bf16.vlgmr.msra.gmra.mxu0 %v1045_v8  ;;  %415 = vmatmul.bf16.vlgmr.msra.gmra.mxu1 %v1051_v9 }
  0x22   :  { %445 = vmatmul.bf16.vlgmr.msra.gmra.mxu2 %v1057_v10  ;;  %480 = vmatmul.bf16.vlgmr.msra.gmra.mxu3 %v1064_v17 }
  0x31   :  { %390 = vmatmul.bf16.gmra.mxu0 %v1046_v11  ;;  %420 = vmatmul.bf16.gmra.mxu1 %v1052_v12 }
  0x32   :  { %450 = vmatmul.bf16.gmra.mxu2 %v1058_v13  ;;  %485 = vmatmul.bf16.gmra.mxu3 %v1065_v21 }
  0x41   :  { %395 = vmatmul.bf16.gmra.mxu0 %v1047_v14  ;;  %425 = vmatmul.bf16.gmra.mxu1 %v1053_v15 }
  0x42   :  { %455 = vmatmul.bf16.gmra.mxu2 %v1059_v16  ;;  %490 = vmatmul.bf16.gmra.mxu3 %v1066_v25 }
  0x51   :  { %400 = vmatmul.bf16.gmra.mxu0 %v1048_v18  ;;  %430 = vmatmul.bf16.gmra.mxu1 %v1054_v19 }
  0x52   :  { %460 = vmatmul.bf16.gmra.mxu2 %v1060_v20  ;;  %495 = vmatmul.bf16.gmra.mxu3 %v1067_v29 }
  0x61   :  { %405 = vmatmul.bf16.gmra.mxu0 %v1049_v22  ;;  %435 = vmatmul.bf16.gmra.mxu1 %v1055_v23 }
  0x62   :  { %465 = vmatmul.bf16.gmra.mxu2 %v1061_v24  ;;  %500 = vmatmul.bf16.gmra.mxu3 %v1068_v31 }
  0x71   :  { %410 = vmatmul.bf16.gmra.mxu0 %v1050_v26  ;;  %440 = vmatmul.bf16.gmra.mxu1 %v1056_v27 }
  0x72   :  { %470 = vmatmul.bf16.gmra.mxu2 %v1062_v28  ;;  %505 = vmatmul.bf16.gmra.mxu3 %v303_v34 }
  0x82   :  { %475 = vmatmul.bf16.gmra.mxu2 %v1063_v30 }
  0x9e   :  { %v386_v35 = vpop.f32.mrf.mxu0  ;;  %v1368_v36 = vpop.f32.mrf.mxu1 }
  0x9f   :  { %v709_v16 = vmul.f32 %v386_v35, %v386_v35 }
  0xa5   :  { %v1370_v37 = vpop.f32.mrf.mxu2  ;;  %v1414_v56 = vpop.f32.mrf.mxu3 }
  0xa6   :  { %v388_v38 = vpop.f32.mrf.mxu0  ;;  %v1372_v39 = vpop.f32.mrf.mxu1 }
  0xa7   :  { %v1080_v40 = vpack.c.bf16 %v388_v38, %v386_v35  ;;  %v1110_v41 = vpack.c.bf16 %v1372_v39, %v1368_v36  ;;  %v710_v15 = vmul.f32 %v388_v38, %v388_v38  ;;  %v660_v17 = vadd.f32 %v388_v38, %v386_v35 }
  0xa9   :  { %1081 = vst [vmem:[%s1662_s2] sm:$0xff] %v1080_v40   ;;  %v758_v19 = vadd.f32 %v710_v15, %v709_v16 }
  0xaa   :  { %1202 = vst [vmem:[%s1662_s2 + $0x30] sm:$0xff] %v1110_v41  }
  0xad   :  { %v1382_v42 = vpop.f32.mrf.mxu2  ;;  %v1428_v62 = vpop.f32.mrf.mxu3 }
  0xae   :  { %v391_v43 = vpop.f32.mrf.mxu0  ;;  %v1384_v44 = vpop.f32.mrf.mxu1  ;;  %v1140_v45 = vpack.c.bf16 %v1382_v42, %v1370_v37  ;;  %v1175_v2 = vpack.c.bf16 %v1428_v62, %v1414_v56 }
  0xaf   :  { %v711_v18 = vmul.f32 %v391_v43, %v391_v43  ;;  %v661_v20 = vadd.f32 %v660_v17, %v391_v43 }
  0xb0   :  { %1208 = vst [vmem:[%s1662_s2 + $0x60] sm:$0xff] %v1140_v45  }
  0xb1   :  { %1215 = vst [vmem:[%s1662_s2 + $0x98] sm:$0xff] %v1175_v2   ;;  %v759_v26 = vadd.f32 %v758_v19, %v711_v18 }
  0xb5   :  { %v1391_v46 = vpop.f32.mrf.mxu2  ;;  %v1444_v4 = vpop.f32.mrf.mxu3 }
  0xb6   :  { %v393_v47 = vpop.f32.mrf.mxu0  ;;  %v1393_v48 = vpop.f32.mrf.mxu1 }
  0xb7   :  { %v1085_v49 = vpack.c.bf16 %v393_v47, %v391_v43  ;;  %v1115_v50 = vpack.c.bf16 %v1393_v48, %v1384_v44  ;;  %v712_v21 = vmul.f32 %v393_v47, %v393_v47  ;;  %v662_v27 = vadd.f32 %v661_v20, %v393_v47 }
  0xb9   :  { %1197 = vst [vmem:[%s1662_s2 + $0x8] sm:$0xff] %v1085_v49   ;;  %v760_v31 = vadd.f32 %v759_v26, %v712_v21 }
  0xba   :  { %1203 = vst [vmem:[%s1662_s2 + $0x38] sm:$0xff] %v1115_v50  }
  0xbd   :  { %v1403_v51 = vpop.f32.mrf.mxu2  ;;  %v1458_v10 = vpop.f32.mrf.mxu3 }
  0xbe   :  { %v396_v52 = vpop.f32.mrf.mxu0  ;;  %v1405_v53 = vpop.f32.mrf.mxu1  ;;  %v1145_v54 = vpack.c.bf16 %v1403_v51, %v1391_v46  ;;  %v1180_v14 = vpack.c.bf16 %v1458_v10, %v1444_v4 }
  0xbf   :  { %v713_v28 = vmul.f32 %v396_v52, %v396_v52  ;;  %v663_v32 = vadd.f32 %v662_v27, %v396_v52  ;;  %v721_v27 = vmul.f32 %v1368_v36, %v1368_v36 }
  0xc0   :  { %1209 = vst [vmem:[%s1662_s2 + $0x68] sm:$0xff] %v1145_v54  }
  0xc1   :  { %1216 = vst [vmem:[%s1662_s2 + $0xa0] sm:$0xff] %v1180_v14   ;;  %v761_v34 = vadd.f32 %v760_v31, %v713_v28 }
  0xc5   :  { %v1412_v55 = vpop.f32.mrf.mxu2  ;;  %v1474_v23 = vpop.f32.mrf.mxu3 }
  0xc6   :  { %v398_v57 = vpop.f32.mrf.mxu0  ;;  %v1416_v58 = vpop.f32.mrf.mxu1 }
  0xc7   :  { %v1090_v59 = vpack.c.bf16 %v398_v57, %v396_v52  ;;  %v1120_v60 = vpack.c.bf16 %v1416_v58, %v1405_v53  ;;  %v714_v33 = vmul.f32 %v398_v57, %v398_v57  ;;  %v664_v35 = vadd.f32 %v663_v32, %v398_v57 }
  0xc8   :  { %v723_v32 = vmul.f32 %v1384_v44, %v1384_v44 }
  0xc9   :  { %1198 = vst [vmem:[%s1662_s2 + $0x10] sm:$0xff] %v1090_v59   ;;  %v762_v40 = vadd.f32 %v761_v34, %v714_v33 }
  0xca   :  { %1204 = vst [vmem:[%s1662_s2 + $0x40] sm:$0xff] %v1120_v60  }
  0xcd   :  { %v1426_v61 = vpop.f32.mrf.mxu2  ;;  %v1488_v47 = vpop.f32.mrf.mxu3 }
  0xce   :  { %v401_v63 = vpop.f32.mrf.mxu0  ;;  %v1430_v0 = vpop.f32.mrf.mxu1  ;;  %v1150_v1 = vpack.c.bf16 %v1426_v61, %v1412_v55  ;;  %v1185_v57 = vpack.c.bf16 %v1488_v47, %v1474_v23 }
  0xcf   :  { %v715_v38 = vmul.f32 %v401_v63, %v401_v63  ;;  %v665_v41 = vadd.f32 %v664_v35, %v401_v63 }
  0xd0   :  { %1210 = vst [vmem:[%s1662_s2 + $0x70] sm:$0xff] %v1150_v1  }
  0xd1   :  { %v763_v54 = vadd.f32 %v762_v40, %v715_v38  ;;  %1217 = vst [vmem:[%s1662_s2 + $0xa8] sm:$0xff] %v1185_v57   ;;  %v724_v40 = vmul.f32 %v1393_v48, %v1393_v48 }
  0xd5   :  { %v1442_v3 = vpop.f32.mrf.mxu2  ;;  %v1504_v16 = vpop.f32.mrf.mxu3 }
  0xd6   :  { %v403_v5 = vpop.f32.mrf.mxu0  ;;  %v1446_v6 = vpop.f32.mrf.mxu1 }
  0xd7   :  { %v1095_v7 = vpack.c.bf16 %v403_v5, %v401_v63  ;;  %v1125_v8 = vpack.c.bf16 %v1446_v6, %v1430_v0  ;;  %v716_v43 = vmul.f32 %v403_v5, %v403_v5  ;;  %v666_v59 = vadd.f32 %v665_v41, %v403_v5 }
  0xd9   :  { %1199 = vst [vmem:[%s1662_s2 + $0x18] sm:$0xff] %v1095_v7   ;;  %v764_v63 = vadd.f32 %v763_v54, %v716_v43 }
  0xda   :  { %1205 = vst [vmem:[%s1662_s2 + $0x48] sm:$0xff] %v1125_v8  }
  0xdd   :  { %v1456_v9 = vpop.f32.mrf.mxu2  ;;  %v1524_v35 = vpop.f32.mrf.mxu3 }
  0xde   :  { %v406_v11 = vpop.f32.mrf.mxu0  ;;  %v1460_v12 = vpop.f32.mrf.mxu1  ;;  %v1155_v13 = vpack.c.bf16 %v1456_v9, %v1442_v3  ;;  %v1190_v43 = vpack.c.bf16 %v1524_v35, %v1504_v16 }
  0xdf   :  { %v717_v60 = vmul.f32 %v406_v11, %v406_v11  ;;  %v667_v1 = vadd.f32 %v666_v59, %v406_v11 }
  0xe0   :  { %1211 = vst [vmem:[%s1662_s2 + $0x78] sm:$0xff] %v1155_v13  }
  0xe1   :  { %v765_v7 = vadd.f32 %v764_v63, %v717_v60  ;;  %1218 = vst [vmem:[%s1662_s2 + $0xb0] sm:$0xff] %v1190_v43   ;;  %v727_v60 = vmul.f32 %v1430_v0, %v1430_v0 }
  0xe5   :  { %v1472_v22 = vpop.f32.mrf.mxu2 }
  0xe6   :  { %v408_v24 = vpop.f32.mrf.mxu0  ;;  %v1476_v25 = vpop.f32.mrf.mxu1 }
  0xe7   :  { %v1100_v29 = vpack.c.bf16 %v408_v24, %v406_v11  ;;  %v1130_v30 = vpack.c.bf16 %v1476_v25, %v1460_v12  ;;  %v718_v2 = vmul.f32 %v408_v24, %v408_v24  ;;  %v668_v8 = vadd.f32 %v667_v1, %v408_v24 }
  0xe9   :  { %1200 = vst [vmem:[%s1662_s2 + $0x20] sm:$0xff] %v1100_v29   ;;  %v766_v14 = vadd.f32 %v765_v7, %v718_v2  ;;  %v722_v29 = vmul.f32 %v1372_v39, %v1372_v39  ;;  %v728_v2 = vmul.f32 %v1446_v6, %v1446_v6 }
  0xea   :  { %1206 = vst [vmem:[%s1662_s2 + $0x50] sm:$0xff] %v1130_v30  }
  0xed   :  { %v1486_v45 = vpop.f32.mrf.mxu2 }
  0xee   :  { %v411_v49 = vpop.f32.mrf.mxu0  ;;  %v1490_v50 = vpop.f32.mrf.mxu1  ;;  %v1160_v52 = vpack.c.bf16 %v1486_v45, %v1472_v22 }
  0xef   :  { %v719_v13 = vmul.f32 %v411_v49, %v411_v49  ;;  %v669_v5 = vadd.f32 %v668_v8, %v411_v49 }
  0xf0   :  { %1212 = vst [vmem:[%s1662_s2 + $0x80] sm:$0xff] %v1160_v52  }
  0xf1   :  { %v767_v19 = vadd.f32 %v766_v14, %v719_v13  ;;  %v729_v13 = vmul.f32 %v1460_v12, %v1460_v12 }
  0xf5   :  { %v1502_v15 = vpop.f32.mrf.mxu2 }
  0xf6   :  { %v413_v17 = vpop.f32.mrf.mxu0  ;;  %v443_v18 = vpop.f32.mrf.mxu1 }
  0xf7   :  { %v670_v20 = vadd.f32 %v669_v5, %v413_v17  ;;  %v720_v21 = vmul.f32 %v413_v17, %v413_v17  ;;  %v1105_v11 = vpack.c.bf16 %v413_v17, %v411_v49  ;;  %v1135_v26 = vpack.c.bf16 %v443_v18, %v1490_v50 }
  0xf9   :  { %v671_v24 = vadd.f32 %v670_v20, %v1368_v36  ;;  %v768_v28 = vadd.f32 %v767_v19, %v720_v21  ;;  %1201 = vst [vmem:[%s1662_s2 + $0x28] sm:$0xff] %v1105_v11   ;;  %v731_v21 = vmul.f32 %v1490_v50, %v1490_v50 }
  0xfa   :  { %1207 = vst [vmem:[%s1662_s2 + $0x58] sm:$0xff] %v1135_v26  }
  0xfb   :  { %v672_v30 = vadd.f32 %v671_v24, %v1372_v39  ;;  %v769_v31 = vadd.f32 %v768_v28, %v721_v27  ;;  %v732_v24 = vmul.f32 %v443_v18, %v443_v18 }
  0xfd   :  { %v673_v36 = vadd.f32 %v672_v30, %v1384_v44  ;;  %v770_v33 = vadd.f32 %v769_v31, %v722_v29  ;;  %v1522_v34 = vpop.f32.mrf.mxu2  ;;  %v725_v44 = vmul.f32 %v1405_v53, %v1405_v53 }
  0xfe   :  { %v1165_v38 = vpack.c.bf16 %v1522_v34, %v1502_v15 }
  0xff   :  { %v674_v41 = vadd.f32 %v673_v36, %v1393_v48  ;;  %v771_v39 = vadd.f32 %v770_v33, %v723_v32  ;;  %v726_v48 = vmul.f32 %v1416_v58, %v1416_v58  ;;  %v735_v32 = vmul.f32 %v1391_v46, %v1391_v46 }
 0x100   :  { %1213 = vst [vmem:[%s1662_s2 + $0x88] sm:$0xff] %v1165_v38  }
 0x101   :  { %v675_v49 = vadd.f32 %v674_v41, %v1405_v53  ;;  %v772_v52 = vadd.f32 %v771_v39, %v724_v40  ;;  %v1550_v53 = vpop.f32.mrf.mxu3  ;;  %v737_v39 = vmul.f32 %v1412_v55, %v1412_v55 }
 0x103   :  { %v773_v54 = vadd.f32 %v772_v52, %v725_v44  ;;  %v676_v59 = vadd.f32 %v675_v49, %v1416_v58  ;;  %v738_v44 = vmul.f32 %v1426_v61, %v1426_v61  ;;  %v739_v52 = vmul.f32 %v1442_v3, %v1442_v3 }
 0x105   :  { %v677_v57 = vadd.f32 %v676_v59, %v1430_v0  ;;  %v774_v63 = vadd.f32 %v773_v54, %v726_v48  ;;  %v1548_v1 = vpop.f32.mrf.mxu2  ;;  %v730_v0 = vmul.f32 %v1476_v25, %v1476_v25 }
 0x107   :  { %v678_v7 = vadd.f32 %v677_v57, %v1446_v6  ;;  %v775_v8 = vadd.f32 %v774_v63, %v727_v60 }
 0x109   :  { %v679_v58 = vadd.f32 %v678_v7, %v1460_v12  ;;  %v776_v14 = vadd.f32 %v775_v8, %v728_v2  ;;  %v1564_v11 = vpop.f32.mrf.mxu3  ;;  %v742_v2 = vmul.f32 %v1486_v45, %v1486_v45 }
 0x10a   :  { %v1195_v28 = vpack.c.bf16 %v1564_v11, %v1550_v53 }
 0x10b   :  { %v680_v5 = vadd.f32 %v679_v58, %v1476_v25  ;;  %v777_v17 = vadd.f32 %v776_v14, %v729_v13  ;;  %v733_v25 = vmul.f32 %v1370_v37, %v1370_v37 }
 0x10c   :  { %1219 = vst [vmem:[%s1662_s2 + $0xb8] sm:$0xff] %v1195_v28   ;;  %v749_v28 = vmul.f32 %v1444_v4, %v1444_v4 }
 0x10d   :  { %v778_v19 = vadd.f32 %v777_v17, %v730_v0  ;;  %v681_v20 = vadd.f32 %v680_v5, %v1490_v50  ;;  %v478_v6 = vpop.f32.mrf.mxu2  ;;  %v744_v0 = vmul.f32 %v1522_v34, %v1522_v34 }
 0x10e   :  { %v1170_v26 = vpack.c.bf16 %v478_v6, %v1548_v1 }
 0x10f   :  { %v779_v27 = vadd.f32 %v778_v19, %v731_v21  ;;  %v682_v12 = vadd.f32 %v681_v20, %v443_v18  ;;  %v734_v18 = vmul.f32 %v1382_v42, %v1382_v42  ;;  %v745_v19 = vmul.f32 %v1548_v1, %v1548_v1 }
 0x110   :  { %1214 = vst [vmem:[%s1662_s2 + $0x90] sm:$0xff] %v1170_v26   ;;  %v746_v21 = vmul.f32 %v478_v6, %v478_v6  ;;  %v747_v26 = vmul.f32 %v1414_v56, %v1414_v56 }
 0x111   :  { %v683_v50 = vadd.f32 %v682_v12, %v1370_v37  ;;  %v780_v29 = vadd.f32 %v779_v27, %v732_v24  ;;  %v1584_v38 = vpop.f32.mrf.mxu3  ;;  %v736_v37 = vmul.f32 %v1403_v51, %v1403_v51  ;;  %v748_v12 = vmul.f32 %v1428_v62, %v1428_v62 }
 0x112   :  { %v855_v59 = vpack.c.bf16 %v1584_v38, %v1584_v38 }
 0x113   :  { %v684_v30 = vadd.f32 %v683_v50, %v1382_v42  ;;  %v781_v31 = vadd.f32 %v780_v29, %v733_v25 }
 0x114   :  { %904 = vst [vmem:[%s1662_s2 + $0xc0] sm:$0xf] %v855_v59 }
 0x115   :  { %v685_v36 = vadd.f32 %v684_v30, %v1391_v46  ;;  %v782_v33 = vadd.f32 %v781_v31, %v734_v18 }
 0x117   :  { %v686_v40 = vadd.f32 %v685_v36, %v1403_v51  ;;  %v783_v41 = vadd.f32 %v782_v33, %v735_v32 }
 0x119   :  { %v687_v42 = vadd.f32 %v686_v40, %v1412_v55  ;;  %v784_v43 = vadd.f32 %v783_v41, %v736_v37  ;;  %v508_v51 = vpop.f32.mrf.mxu3  ;;  %v740_v55 = vmul.f32 %v1456_v9, %v1456_v9  ;;  %v755_v41 = vmul.f32 %v1550_v53, %v1550_v53 }
 0x11b   :  { %v785_v49 = vadd.f32 %v784_v43, %v737_v39  ;;  %v688_v46 = vadd.f32 %v687_v42, %v1426_v61  ;;  %v741_v61 = vmul.f32 %v1472_v22, %v1472_v22  ;;  %v756_v43 = vmul.f32 %v1564_v11, %v1564_v11 }
 0x11d   :  { %v689_v48 = vadd.f32 %v688_v46, %v1442_v3  ;;  %v786_v54 = vadd.f32 %v785_v49, %v738_v44  ;;  %v757_v49 = vmul.f32 %v1584_v38, %v1584_v38 }
 0x11f   :  { %v690_v60 = vadd.f32 %v689_v48, %v1456_v9  ;;  %v787_v57 = vadd.f32 %v786_v54, %v739_v52  ;;  %v743_v9 = vmul.f32 %v1502_v15, %v1502_v15 }
 0x121   :  { %v691_v3 = vadd.f32 %v690_v60, %v1472_v22  ;;  %v788_v63 = vadd.f32 %v787_v57, %v740_v55 }
 0x123   :  { %v692_v7 = vadd.f32 %v691_v3, %v1486_v45  ;;  %v789_v8 = vadd.f32 %v788_v63, %v741_v61 }
 0x125   :  { %v693_v13 = vadd.f32 %v692_v7, %v1502_v15  ;;  %v790_v58 = vadd.f32 %v789_v8, %v742_v2 }
 0x127   :  { %v791_v14 = vadd.f32 %v790_v58, %v743_v9  ;;  %v694_v5 = vadd.f32 %v693_v13, %v1522_v34 }
 0x129   :  { %v792_v22 = vadd.f32 %v791_v14, %v744_v0  ;;  %v695_v17 = vadd.f32 %v694_v5, %v1548_v1 }
 0x12b   :  { %v793_v45 = vadd.f32 %v792_v22, %v745_v19  ;;  %v696_v20 = vadd.f32 %v695_v17, %v478_v6  ;;  %v750_v6 = vmul.f32 %v1458_v10, %v1458_v10 }
 0x12d   :  { %v697_v15 = vadd.f32 %v696_v20, %v1414_v56  ;;  %v794_v27 = vadd.f32 %v793_v45, %v746_v21  ;;  %v751_v56 = vmul.f32 %v1474_v23, %v1474_v23 }
 0x12f   :  { %v698_v34 = vadd.f32 %v697_v15, %v1428_v62  ;;  %v795_v24 = vadd.f32 %v794_v27, %v747_v26  ;;  %v752_v62 = vmul.f32 %v1488_v47, %v1488_v47 }
 0x131   :  { %v699_v1 = vadd.f32 %v698_v34, %v1444_v4  ;;  %v796_v25 = vadd.f32 %v795_v24, %v748_v12  ;;  %v753_v4 = vmul.f32 %v1504_v16, %v1504_v16 }
 0x133   :  { %v700_v50 = vadd.f32 %v699_v1, %v1458_v10  ;;  %v797_v29 = vadd.f32 %v796_v25, %v749_v28  ;;  %v754_v10 = vmul.f32 %v1524_v35, %v1524_v35 }
 0x135   :  { %v798_v18 = vadd.f32 %v797_v29, %v750_v6  ;;  %v701_v30 = vadd.f32 %v700_v50, %v1474_v23 }
 0x137   :  { %v702_v31 = vadd.f32 %v701_v30, %v1488_v47  ;;  %v799_v32 = vadd.f32 %v798_v18, %v751_v56 }
 0x139   :  { %v703_v36 = vadd.f32 %v702_v31, %v1504_v16  ;;  %v800_v33 = vadd.f32 %v799_v32, %v752_v62 }
 0x13b   :  { %v704_v37 = vadd.f32 %v703_v36, %v1524_v35  ;;  %v801_v40 = vadd.f32 %v800_v33, %v753_v4 }
 0x13d   :  { %v705_v23 = vadd.f32 %v704_v37, %v1550_v53  ;;  %v802_v39 = vadd.f32 %v801_v40, %v754_v10 }
 0x13f   :  { %v803_v47 = vadd.f32 %v802_v39, %v755_v41  ;;  %v706_v42 = vadd.f32 %v705_v23, %v1564_v11 }
 0x141   :  { %v804_v16 = vadd.f32 %v803_v47, %v756_v43  ;;  %v707_v44 = vadd.f32 %v706_v42, %v1584_v38 }
 0x143   :  { %708 = vst [vmem:[%s1663_s3] sm:$0xff] %v707_v44  ;;  %v805_v35 = vadd.f32 %v804_v16, %v757_v49 }
 0x145   :  { %806 = vst [vmem:[%s1664_s4] sm:$0xff] %v805_v35 }

</bundles_post_ra>
